<compile_context>
chip_gen: v5e
topology: v5e:2x2
jax: 0.10.0
libtpu: 0.0.40
codegen_flags: <defaults>
</compile_context>

<pallas_src>
import functools

import jax
import jax.numpy as jnp
from jax.experimental import pallas as pl
from jax.experimental.pallas import tpu as pltpu


def mlp_kernel(x_ref, w1_ref, b1_ref, w2_ref, b2_ref, o_ref):
    # In-kernel cast of the activation tile to bf16 (VPU; no slot is near
    # saturation here, and it saves a whole wrapper-side pad/cast pass).
    x = x_ref[...].astype(jnp.bfloat16)
    # fc1: (tb, F) @ (F, Hp) -> f32 accumulation on the MXU.
    h = jnp.dot(x, w1_ref[...], preferred_element_type=jnp.float32)
    h = h + b1_ref[...]                      # f32 bias add (VPU)
    h = jax.nn.sigmoid(h)                    # logistic -> EUP path
    # fc2: (tb, Hp) @ (Hp, Op) -> f32 accumulation on the MXU.
    out = jnp.dot(h.astype(jnp.bfloat16), w2_ref[...],
                  preferred_element_type=jnp.float32)
    o_ref[...] = (out + b2_ref[...]).astype(o_ref.dtype)


def _round_up(n, m):
    return ((n + m - 1) // m) * m


def _cdiv(a, b):
    return -(-a // b)


def prep_params(w1, b1, w2, b2):
    """One-time pad+cast of the weights/biases (do NOT call per forward).

    w1: (F, H), b1: (1, H), w2: (H, O), b2: (1, O)  ->  padded device arrays.
    Zero padding is semantically safe: padded hidden units see sigmoid(0)=0.5
    but multiply zero rows of w2_p, contributing nothing to real outputs;
    padded output columns are sliced off in mlp_forward.
    """
    F, H = w1.shape
    O = w2.shape[1]
    Hp = _round_up(H, 128)
    Op = _round_up(O, 128)
    w1_p = jnp.zeros((F, Hp), jnp.bfloat16).at[:, :H].set(w1.astype(jnp.bfloat16))
    b1_p = jnp.zeros((1, Hp), jnp.float32).at[:, :H].set(b1.astype(jnp.float32))
    w2_p = jnp.zeros((Hp, Op), jnp.bfloat16).at[:H, :O].set(w2.astype(jnp.bfloat16))
    b2_p = jnp.zeros((1, Op), jnp.float32).at[:H, :O].set(b2.astype(jnp.float32))
    return w1_p, b1_p, w2_p, b2_p


def _mlp_forward_impl(x, w1_p, b1_p, w2_p, b2_p, out_features, batch_tile):
    """x: (B, F) f32, params pre-padded by prep_params. Returns (B, O) f32."""
    B, F = x.shape
    Hp = w1_p.shape[1]
    Op = w2_p.shape[1]

    # Adaptive batch tiling: pad B only to a sublane multiple (8), then split
    # into ceil(Bp / batch_tile) equal tiles.  Padding waste is <= 7 rows for
    # any B, and batches > batch_tile naturally give >= 2 grid steps so the
    # "parallel" axis can shard across v7x's two TensorCores.
    Bp = _round_up(B, 8)
    n_tiles = _cdiv(Bp, batch_tile)
    tb = _round_up(_cdiv(Bp, n_tiles), 8)
    Bp = n_tiles * tb

    x_p = x if Bp == B else jnp.zeros((Bp, F), x.dtype).at[:B, :].set(x)

    out_p = pl.pallas_call(
        mlp_kernel,
        out_shape=jax.ShapeDtypeStruct((Bp, Op), jnp.float32),
        grid=(n_tiles,),
        in_specs=[
            # x: tiled over batch; last dim == full F (784), so no 128-pad of
            # the K dimension is needed.
            pl.BlockSpec((tb, F), lambda i: (i, 0)),
            pl.BlockSpec((F, Hp), lambda i: (0, 0)),    # w1: resident
            pl.BlockSpec((1, Hp), lambda i: (0, 0)),    # b1: resident
            pl.BlockSpec((Hp, Op), lambda i: (0, 0)),   # w2: resident
            pl.BlockSpec((1, Op), lambda i: (0, 0)),    # b2: resident
        ],
        out_specs=pl.BlockSpec((tb, Op), lambda i: (i, 0)),
        compiler_params=pltpu.CompilerParams(
            dimension_semantics=("parallel",)),
    )(x_p, w1_p, b1_p, w2_p, b2_p)

    return out_p[:B, :out_features]


# out_features and batch_tile are static; only activations are traced per call.
mlp_forward = functools.partial(
    jax.jit(_mlp_forward_impl, static_argnums=(5, 6)))


def init_params(key, input_features, hidden_size, output_features):
    # Deterministic init mimicking PyTorch nn.Linear default:
    # U(-1/sqrt(fan_in), +1/sqrt(fan_in))
    k1, k2, k3, k4 = jax.random.split(key, 4)
    bound1 = 1.0 / jnp.sqrt(input_features)
    bound2 = 1.0 / jnp.sqrt(hidden_size)
    w1 = jax.random.uniform(k1, (input_features, hidden_size), jnp.float32,
                            -bound1, bound1)
    b1 = jax.random.uniform(k2, (1, hidden_size), jnp.float32, -bound1, bound1)
    w2 = jax.random.uniform(k3, (hidden_size, output_features), jnp.float32,
                            -bound2, bound2)
    b2 = jax.random.uniform(k4, (1, output_features), jnp.float32,
                            -bound2, bound2)
    return w1, b1, w2, b2


if __name__ == "__main__":
    # Small MNIST-like shapes: batch=8, input_features=784 (28*28),
    # hidden_size=32, output_features=10.
    B, F, H, O = 8, 784, 32, 10

    key = jax.random.PRNGKey(0)
    kx, kp = jax.random.split(key)
    x = jax.random.normal(kx, (B, F), jnp.float32)
    w1, b1, w2, b2 = init_params(kp, F, H, O)

    # One-time weight prep (hoisted out of the per-call path).
    w1_p, b1_p, w2_p, b2_p = prep_params(w1, b1, w2, b2)
    w1_p, b1_p, w2_p, b2_p = jax.block_until_ready((w1_p, b1_p, w2_p, b2_p))

    out = mlp_forward(x, w1_p, b1_p, w2_p, b2_p, O, 256)
    out = jax.block_until_ready(out)
    assert out.shape == (B, O)

    # Reference: same bf16 rounding of the matmul operands, f32 math on host.
    hp = jax.lax.Precision.HIGHEST
    xb = x.astype(jnp.bfloat16).astype(jnp.float32)
    w1b = w1.astype(jnp.bfloat16).astype(jnp.float32)
    w2b = w2.astype(jnp.bfloat16).astype(jnp.float32)
    h_ref = jax.nn.sigmoid(jnp.dot(xb, w1b, precision=hp) + b1)
    ref = jnp.dot(h_ref.astype(jnp.bfloat16).astype(jnp.float32),
                  w2b, precision=hp) + b2
    assert jnp.allclose(out, ref, atol=5e-3, rtol=5e-3)

    print("KERNEL_OK")
</pallas_src>

<mosaic_0001>
module attributes {stable_mosaic.version = 11 : i64} {
  func.func @mlp_kernel(%arg0: i32, %arg1: memref<8x784xf32, #tpu.memory_space<vmem>>, %arg2: memref<784x128xbf16, #tpu.memory_space<vmem>>, %arg3: memref<1x128xf32, #tpu.memory_space<vmem>>, %arg4: memref<128x128xbf16, #tpu.memory_space<vmem>>, %arg5: memref<1x128xf32, #tpu.memory_space<vmem>>, %arg6: memref<8x128xf32, #tpu.memory_space<vmem>>) attributes {dimension_semantics = [#tpu.dimension_semantics<parallel>], iteration_bounds = array<i64: 1>, scalar_prefetch = 0 : i64, scratch_operands = 0 : i64, tpu.core_type = #tpu.core_type<tc>, window_params = [{transform_indices = @transform_0, window_bounds = array<i64: 8, 784>}, {pipeline_mode = #tpu.pipeline_mode<synchronous>, transform_indices = @transform_1, window_bounds = array<i64: 784, 128>}, {pipeline_mode = #tpu.pipeline_mode<synchronous>, transform_indices = @transform_2, window_bounds = array<i64: 1, 128>}, {pipeline_mode = #tpu.pipeline_mode<synchronous>, transform_indices = @transform_3, window_bounds = array<i64: 128, 128>}, {pipeline_mode = #tpu.pipeline_mode<synchronous>, transform_indices = @transform_4, window_bounds = array<i64: 1, 128>}, {transform_indices = @transform_5, window_bounds = array<i64: 8, 128>}]} {
    %c0 = arith.constant 0 : index
    %c0_0 = arith.constant 0 : index
    %0 = vector.load %arg1[%c0, %c0_0] : memref<8x784xf32, #tpu.memory_space<vmem>>, vector<8x784xf32>
    %1 = arith.truncf %0 : vector<8x784xf32> to vector<8x784xbf16>
    %c0_1 = arith.constant 0 : index
    %c0_2 = arith.constant 0 : index
    %2 = vector.load %arg2[%c0_1, %c0_2] : memref<784x128xbf16, #tpu.memory_space<vmem>>, vector<784x128xbf16>
    %cst = arith.constant dense<0.000000e+00> : vector<8x128xf32>
    %3 = tpu.matmul %1, %2, %cst {dimension_numbers = #tpu.dot_dimension_numbers<[1], [0], [0], [1], [0, 0, 1, 1], [], []>} : vector<8x784xbf16>, vector<784x128xbf16>, vector<8x128xf32> -> vector<8x128xf32>
    %c0_3 = arith.constant 0 : index
    %c0_4 = arith.constant 0 : index
    %4 = vector.load %arg3[%c0_3, %c0_4] : memref<1x128xf32, #tpu.memory_space<vmem>>, vector<1x128xf32>
    %5 = vector.broadcast %4 : vector<1x128xf32> to vector<8x128xf32>
    %6 = arith.addf %3, %5 : vector<8x128xf32>
    %7 = arith.negf %6 : vector<8x128xf32>
    %8 = math.exp %7 : vector<8x128xf32>
    %cst_5 = arith.constant 1.000000e+00 : f32
    %9 = vector.broadcast %cst_5 : f32 to vector<8x128xf32>
    %10 = arith.addf %9, %8 : vector<8x128xf32>
    %11 = arith.divf %9, %10 : vector<8x128xf32>
    %12 = arith.truncf %11 : vector<8x128xf32> to vector<8x128xbf16>
    %c0_6 = arith.constant 0 : index
    %c0_7 = arith.constant 0 : index
    %13 = vector.load %arg4[%c0_6, %c0_7] : memref<128x128xbf16, #tpu.memory_space<vmem>>, vector<128x128xbf16>
    %cst_8 = arith.constant dense<0.000000e+00> : vector<8x128xf32>
    %14 = tpu.matmul %12, %13, %cst_8 {dimension_numbers = #tpu.dot_dimension_numbers<[1], [0], [0], [1], [0, 0, 1, 1], [], []>} : vector<8x128xbf16>, vector<128x128xbf16>, vector<8x128xf32> -> vector<8x128xf32>
    %c0_9 = arith.constant 0 : index
    %c0_10 = arith.constant 0 : index
    %15 = vector.load %arg5[%c0_9, %c0_10] : memref<1x128xf32, #tpu.memory_space<vmem>>, vector<1x128xf32>
    %16 = vector.broadcast %15 : vector<1x128xf32> to vector<8x128xf32>
    %17 = arith.addf %14, %16 : vector<8x128xf32>
    %c0_11 = arith.constant 0 : index
    %c0_12 = arith.constant 0 : index
    %18 = vector.load %arg6[%c0_11, %c0_12] : memref<8x128xf32, #tpu.memory_space<vmem>>, vector<8x128xf32>
    tpu.vector_store %arg6[%c0_11, %c0_12], %17 {strides = array<i32>} : memref<8x128xf32, #tpu.memory_space<vmem>>, vector<8x128xf32>,
    return
  }
  func.func @transform_0(%arg0: i32) -> (i32, i32) {
    %c0_i32 = arith.constant 0 : i32
    %c0_i32_0 = arith.constant 0 : i32
    return %arg0, %c0_i32 : i32, i32
  }
  func.func @transform_1(%arg0: i32) -> (i32, i32) {
    %c0_i32 = arith.constant 0 : i32
    %c0_i32_0 = arith.constant 0 : i32
    %c0_i32_1 = arith.constant 0 : i32
    return %c0_i32, %c0_i32_0 : i32, i32
  }
  func.func @transform_2(%arg0: i32) -> (i32, i32) {
    %c0_i32 = arith.constant 0 : i32
    %c0_i32_0 = arith.constant 0 : i32
    %c0_i32_1 = arith.constant 0 : i32
    return %c0_i32, %c0_i32_0 : i32, i32
  }
  func.func @transform_3(%arg0: i32) -> (i32, i32) {
    %c0_i32 = arith.constant 0 : i32
    %c0_i32_0 = arith.constant 0 : i32
    %c0_i32_1 = arith.constant 0 : i32
    return %c0_i32, %c0_i32_0 : i32, i32
  }
  func.func @transform_4(%arg0: i32) -> (i32, i32) {
    %c0_i32 = arith.constant 0 : i32
    %c0_i32_0 = arith.constant 0 : i32
    %c0_i32_1 = arith.constant 0 : i32
    return %c0_i32, %c0_i32_0 : i32, i32
  }
  func.func @transform_5(%arg0: i32) -> (i32, i32) {
    %c0_i32 = arith.constant 0 : i32
    %c0_i32_0 = arith.constant 0 : i32
    return %arg0, %c0_i32 : i32, i32
  }
}

</mosaic_0001>

<bundles_post_ra>
// kernel: _mlp_forward_impl.1
= control target key start
LH: loop header
LB: loop body
LE: loop exit
PB: predicated region body
PF: predicated region fallthrough
CT: control target
= control target key end

     0   :  { %10 = vsyncpa [#allocation3], 0  ;;  %s1147_s0 = inlined_call_operand.hbm [shape: f32[8,784], index: 0, kind: input, shape index: {}]   ;;  %s1148_s1 = inlined_call_operand.hbm [shape: bf16[784,128], index: 1, kind: input, shape index: {}]   ;;  %s1149_s2 = inlined_call_operand.vmem [shape: f32[1,128], index: 2, kind: input, shape index: {}]   ;;  %s1150_s3 = inlined_call_operand.hbm [shape: bf16[128,128], index: 3, kind: input, shape index: {}]   ;;  %s1151_s4 = inlined_call_operand.vmem [shape: f32[1,128], index: 4, kind: input, shape index: {}]   ;;  %s1152_s5 = inlined_call_operand.hbm [shape: f32[8,128], index: 5, kind: output, shape index: {}]  }
   0x1   :  { %11 = vsyncpa [#allocation6], 0  ;;  %s28_s20 = sshll.u32 %s1148_s1, 4  ;;  %s29_s20 = int_to_ptr.hbm [resolvable:$true] %s28_s20 }
   0x2   :  { %12 = vsyncpa [#allocation4], 0  ;;  %s1093_s21 = smov [#allocation5]   ;;  %s18_s25 = sshll.u32 %s1147_s0, 4  ;;  %s19_s25 = int_to_ptr.hbm [resolvable:$true] %s18_s25 }
   0x3   :  { %s30_s22 = sshll.u32 %s1093_s21, 4  ;;  %s1094_s26 = smov 64   ;;  %s31_s22 = int_to_ptr.vmem [resolvable:$true] %s30_s22 }
   0x4   :  { %s1095_s27 = smov 4   ;;  %s1096_s28 = smov [#allocation2]  }
   0x5   :  { %36 = dma.hbm_to_vmem [thread:$0]  %s29_s20, 6272, %s31_s22, [#allocation6], %s1094_s26, %s1094_s26, %s1095_s27  }
   0x6   :  { %s20_s29 = sshll.u32 %s1096_s28, 4  ;;  %s43_s7 = sshll.u32 %s1150_s3, 4  ;;  %s21_s29 = int_to_ptr.vmem [resolvable:$true] %s20_s29  ;;  %s44_s7 = int_to_ptr.hbm [resolvable:$true] %s43_s7 }
   0x7   :  { %23 = dma.hbm_to_vmem [thread:$0]  %s19_s25, 896, %s21_s29, [#allocation3]  }
   0x8   :  { %s1097_s1 = smov [#allocation7]  }
   0x9   :  { %s45_s8 = sshll.u32 %s1097_s1, 4  ;;  %s46_s8 = int_to_ptr.vmem [resolvable:$true] %s45_s8 }
   0xa   :  { %51 = dma.hbm_to_vmem [thread:$0]  %s44_s7, 1024, %s46_s8, [#allocation6], %s1094_s26, %s1094_s26, %s1095_s27  }
   0xb   :  { %1087 = dma.done.wait [#allocation3], 896  }
   0xc   :  { %1088 = vsyncadd [#allocation3], 4294966400 }
   0xd   :  { %1089 = dma.done.wait [#allocation6], 7296  }
   0xe   :  { %1090 = vsyncadd [#allocation6], 4294960000  ;;  %v929_v0 = vld [vmem:[#allocation5 + $0x38] sm:$0xff]  ;;  %v928_v3 = vld [vmem:[#allocation5 + $0x30] sm:$0xff]  ;;  %vm477_vm0 = vcmask 130048   ;;  %s1098_s10 = smov [#allocation8]  }
   0xf   :  { %v937_v1 = vld [vmem:[#allocation5 + $0x78] sm:$0xff]  ;;  %481 = vmatpush.bf16.msra.mxu0 %v929_v0  ;;  %v936_v4 = vld [vmem:[#allocation5 + $0x70] sm:$0xff]  ;;  %v927_v8 = vld [vmem:[#allocation5 + $0x28] sm:$0xff]  ;;  %s679_s11 = sshll.u32 %s1098_s10, 4  ;;  %s681_s14 = sshll.u32 %s1152_s5, 4  ;;  %s680_s11 = int_to_ptr.vmem [resolvable:$true] %s679_s11  ;;  %s682_s14 = int_to_ptr.hbm [resolvable:$true] %s681_s14 }
  0x10   :  { %v945_v2 = vld [vmem:[#allocation5 + $0xb8] sm:$0xff]  ;;  %494 = vmatpush.bf16.msra.mxu1 %v937_v1  ;;  %v944_v5 = vld [vmem:[#allocation5 + $0xb0] sm:$0xff]  ;;  %v935_v9 = vld [vmem:[#allocation5 + $0x68] sm:$0xff] }
  0x11   :  { %507 = vmatpush.bf16.msra.mxu2 %v945_v2  ;;  %v953_v6 = vld [vmem:[#allocation5 + $0xf8] sm:$0xff]  ;;  %v952_v7 = vld [vmem:[#allocation5 + $0xf0] sm:$0xff]  ;;  %v943_v10 = vld [vmem:[#allocation5 + $0xa8] sm:$0xff] }
  0x12   :  { %520 = vmatpush.bf16.msra.mxu3 %v953_v6  ;;  %v951_v11 = vld [vmem:[#allocation5 + $0xe8] sm:$0xff]  ;;  %v926_v12 = vld [vmem:[#allocation5 + $0x20] sm:$0xff]  ;;  %v925_v16 = vld [vmem:[#allocation5 + $0x18] sm:$0xff] }
  0x13   :  { %482 = vmatpush.bf16.msra.mxu0 %v928_v3  ;;  %v934_v13 = vld [vmem:[#allocation5 + $0x60] sm:$0xff]  ;;  %v933_v17 = vld [vmem:[#allocation5 + $0x58] sm:$0xff]  ;;  %v924_v20 = vld [vmem:[#allocation5 + $0x10] sm:$0xff] }
  0x14   :  { %495 = vmatpush.bf16.msra.mxu1 %v936_v4  ;;  %v942_v14 = vld [vmem:[#allocation5 + $0xa0] sm:$0xff]  ;;  %v941_v18 = vld [vmem:[#allocation5 + $0x98] sm:$0xff]  ;;  %v932_v21 = vld [vmem:[#allocation5 + $0x50] sm:$0xff] }
  0x15   :  { %508 = vmatpush.bf16.msra.mxu2 %v944_v5  ;;  %v950_v15 = vld [vmem:[#allocation5 + $0xe0] sm:$0xff]  ;;  %v949_v19 = vld [vmem:[#allocation5 + $0xd8] sm:$0xff]  ;;  %v940_v22 = vld [vmem:[#allocation5 + $0x90] sm:$0xff] }
  0x16   :  { %521 = vmatpush.bf16.msra.mxu3 %v952_v7  ;;  %v948_v23 = vld [vmem:[#allocation5 + $0xd0] sm:$0xff]  ;;  %v923_v24 = vld [vmem:[#allocation5 + $0x8] sm:$0xff]  ;;  %v922_v27 = vld [vmem:[#allocation5] sm:$0xff] }
  0x17   :  { %483 = vmatpush.bf16.msra.mxu0 %v927_v8  ;;  %v931_v25 = vld [vmem:[#allocation5 + $0x48] sm:$0xff]  ;;  %v930_v29 = vld [vmem:[#allocation5 + $0x40] sm:$0xff]  ;;  %v68_v31 = vld [vmem:[#allocation2 + $0x8] sm:$0xff] }
  0x18   :  { %496 = vmatpush.bf16.msra.mxu1 %v935_v9  ;;  %v939_v26 = vld [vmem:[#allocation5 + $0x88] sm:$0xff]  ;;  %v961_v32 = vld [vmem:[#allocation5 + $0x138] sm:$0xff]  ;;  %v938_v34 = vld [vmem:[#allocation5 + $0x80] sm:$0xff]  ;;  %v75_v37 = vpack.c.bf16 %v68_v31, %v68_v31 }
  0x19   :  { %509 = vmatpush.bf16.msra.mxu2 %v943_v10  ;;  %v947_v28 = vld [vmem:[#allocation5 + $0xc8] sm:$0xff]  ;;  %v969_v33 = vld [vmem:[#allocation5 + $0x178] sm:$0xff]  ;;  %v946_v38 = vld [vmem:[#allocation5 + $0xc0] sm:$0xff] }
  0x1a   :  { %522 = vmatpush.bf16.msra.mxu3 %v951_v11  ;;  %v67_v30 = vld [vmem:[#allocation2] sm:$0xff]  ;;  %v69_v35 = vld [vmem:[#allocation2 + $0x10] sm:$0xff]  ;;  %v970_v39 = vld [vmem:[#allocation5 + $0x180] sm:$0xff] }
  0x1b   :  { %484 = vmatpush.bf16.msra.mxu0 %v926_v12  ;;  %v74_v36 = vpack.c.bf16 %v67_v30, %v67_v30  ;;  %v70_v40 = vld [vmem:[#allocation2 + $0x18] sm:$0xff]  ;;  %v960_v41 = vld [vmem:[#allocation5 + $0x130] sm:$0xff]  ;;  %v76_v43 = vpack.c.bf16 %v69_v35, %v69_v35  ;;  %v959_v45 = vld [vmem:[#allocation5 + $0x128] sm:$0xff] }
  0x1c   :  { %497 = vmatpush.bf16.msra.mxu1 %v934_v13  ;;  %v968_v42 = vld [vmem:[#allocation5 + $0x170] sm:$0xff]  ;;  %v77_v44 = vpack.c.bf16 %v70_v40, %v70_v40  ;;  %v967_v46 = vld [vmem:[#allocation5 + $0x168] sm:$0xff]  ;;  %v958_v47 = vld [vmem:[#allocation5 + $0x120] sm:$0xff] }
  0x1d   :  { %510 = vmatpush.bf16.msra.mxu2 %v942_v14  ;;  %v966_v48 = vld [vmem:[#allocation5 + $0x160] sm:$0xff]  ;;  %v957_v49 = vld [vmem:[#allocation5 + $0x118] sm:$0xff]  ;;  %v956_v52 = vld [vmem:[#allocation5 + $0x110] sm:$0xff] }
  0x1e   :  { %523 = vmatpush.bf16.msra.mxu3 %v950_v15  ;;  %v965_v50 = vld [vmem:[#allocation5 + $0x158] sm:$0xff]  ;;  %v964_v53 = vld [vmem:[#allocation5 + $0x150] sm:$0xff]  ;;  %v955_v55 = vld [vmem:[#allocation5 + $0x108] sm:$0xff] }
  0x1f   :  { %485 = vmatpush.bf16.msra.mxu0 %v925_v16  ;;  %v73_v51 = vld [vmem:[#allocation2 + $0x30] sm:$0xff]  ;;  %v963_v56 = vld [vmem:[#allocation5 + $0x148] sm:$0xff]  ;;  %v954_v57 = vld [vmem:[#allocation5 + $0x100] sm:$0xff] }
  0x20   :  { %498 = vmatpush.bf16.msra.mxu1 %v933_v17  ;;  %v80_v54 = vpack.c.bf16 %v73_v51, %v73_v51  ;;  %v962_v58 = vld [vmem:[#allocation5 + $0x140] sm:$0xff]  ;;  %v71_v59 = vld [vmem:[#allocation2 + $0x20] sm:$0xff]  ;;  %v72_v60 = vld [vmem:[#allocation2 + $0x28] sm:$0xff] }
  0x21   :  { %511 = vmatpush.bf16.msra.mxu2 %v941_v18  ;;  %v78_v61 = vpack.c.bf16 %v71_v59, %v71_v59  ;;  %v79_v62 = vpack.c.bf16 %v72_v60, %v72_v60  ;;  %v978_v1 = vld [vmem:[#allocation7 + $0x38] sm:$0xff]  ;;  %v977_v2 = vld [vmem:[#allocation7 + $0x30] sm:$0xff]  ;;  %v976_v6 = vld [vmem:[#allocation7 + $0x28] sm:$0xff] }
  0x22   :  { %524 = vmatpush.bf16.msra.mxu3 %v949_v19  ;;  %v985_v8 = vld [vmem:[%s1149_s2] ss:$0 sm:$0xff]  ;;  %v974_v10 = vld [vmem:[#allocation7 + $0x18] sm:$0xff]  ;;  %v973_v14 = vld [vmem:[#allocation7 + $0x10] sm:$0xff] }
  0x23   :  { %486 = vmatpush.bf16.msra.mxu0 %v924_v20  ;;  %v975_v9 = vld [vmem:[#allocation7 + $0x20] sm:$0xff]  ;;  %v972_v16 = vld [vmem:[#allocation7 + $0x8] sm:$0xff] }
  0x24   :  { %499 = vmatpush.bf16.msra.mxu1 %v932_v21  ;;  %v971_v19 = vld [vmem:[#allocation7] sm:$0xff] }
  0x25   :  { %512 = vmatpush.bf16.msra.mxu2 %v940_v22 }
  0x26   :  { %525 = vmatpush.bf16.msra.mxu3 %v948_v23 }
  0x27   :  { %487 = vmatpush.bf16.msra.mxu0 %v923_v24 }
  0x28   :  { %500 = vmatpush.bf16.msra.mxu1 %v931_v25 }
  0x29   :  { %513 = vmatpush.bf16.msra.mxu2 %v939_v26 }
  0x2a   :  { %526 = vmatpush.bf16.msra.mxu3 %v947_v28 }
  0x2b   :  { %488 = vmatpush.bf16.msra.mxu0 %v922_v27 }
  0x2c   :  { %501 = vmatpush.bf16.msra.mxu1 %v930_v29 }
  0x2d   :  { %514 = vmatpush.bf16.msra.mxu2 %v938_v34 }
  0x2e   :  { %489 = vmatmul.bf16.vlgmr.msra.gmra.mxu0 %v74_v36  ;;  %527 = vmatpush.bf16.msra.mxu3 %v946_v38 }
  0x2f   :  { %533 = vmatpush.bf16.msrb.mxu0 %v961_v32  ;;  %502 = vmatmul.bf16.vlgmr.msra.gmra.mxu1 %v75_v37 }
  0x30   :  { %546 = vmatpush.bf16.msrb.mxu1 %v969_v33  ;;  %515 = vmatmul.bf16.vlgmr.msra.gmra.mxu2 %v76_v43  ;;  %v986_v43 = vld [vmem:[%s1151_s4] ss:$0 sm:$0xff] }
  0x31   :  { %566 = vmatpush.bf16.msrb.mxu2 %v970_v39  ;;  %528 = vmatmul.bf16.vlgmr.msra.gmra.mxu3 %v77_v44 }
  0x32   :  { %660 = vmatpush.bf16.msrb.mxu3 %v978_v1 }
  0x33   :  { %534 = vmatpush.bf16.msrb.mxu0 %v960_v41 }
  0x34   :  { %547 = vmatpush.bf16.msrb.mxu1 %v968_v42 }
  0x36   :  { %661 = vmatpush.bf16.msrb.mxu3 %v977_v2 }
  0x37   :  { %535 = vmatpush.bf16.msrb.mxu0 %v959_v45 }
  0x38   :  { %548 = vmatpush.bf16.msrb.mxu1 %v967_v46 }
  0x3a   :  { %662 = vmatpush.bf16.msrb.mxu3 %v976_v6 }
  0x3b   :  { %536 = vmatpush.bf16.msrb.mxu0 %v958_v47 }
  0x3c   :  { %549 = vmatpush.bf16.msrb.mxu1 %v966_v48 }
  0x3e   :  { %663 = vmatpush.bf16.msrb.mxu3 %v975_v9 }
  0x3f   :  { %537 = vmatpush.bf16.msrb.mxu0 %v957_v49 }
  0x40   :  { %550 = vmatpush.bf16.msrb.mxu1 %v965_v50  ;;  %888 = vmatmul.msk.bf16.vlgmr.msrb.gmra.mxu2 %vm477_vm0, %v80_v54 }
  0x42   :  { %664 = vmatpush.bf16.msrb.mxu3 %v974_v10 }
  0x43   :  { %538 = vmatpush.bf16.msrb.mxu0 %v956_v52 }
  0x44   :  { %551 = vmatpush.bf16.msrb.mxu1 %v964_v53 }
  0x46   :  { %665 = vmatpush.bf16.msrb.mxu3 %v973_v14 }
  0x47   :  { %539 = vmatpush.bf16.msrb.mxu0 %v955_v55 }
  0x48   :  { %552 = vmatpush.bf16.msrb.mxu1 %v963_v56 }
  0x4a   :  { %666 = vmatpush.bf16.msrb.mxu3 %v972_v16 }
  0x4b   :  { %540 = vmatpush.bf16.msrb.mxu0 %v954_v57 }
  0x4c   :  { %553 = vmatpush.bf16.msrb.mxu1 %v962_v58 }
  0x4e   :  { %541 = vmatmul.bf16.vlgmr.msrb.gmra.mxu0 %v78_v61  ;;  %667 = vmatpush.bf16.msrb.mxu3 %v971_v19 }
  0x4f   :  { %554 = vmatmul.bf16.vlgmr.msrb.gmra.mxu1 %v79_v62 }
  0xab   :  { %v490_v63 = vpop.f32.mrf.mxu0 }
  0xac   :  { %v503_v0 = vpop.f32.mrf.mxu1  ;;  %v491_v11 = vadd.f32 %v985_v8, %v490_v63 }
  0xae   :  { %v504_v15 = vadd.f32 %v503_v0, %v491_v11 }
  0xb3   :  { %v492_v3 = vpop.f32.mrf.mxu0  ;;  %v516_v5 = vpop.f32.mrf.mxu2 }
  0xb4   :  { %v505_v4 = vpop.f32.mrf.mxu1  ;;  %v529_v7 = vpop.f32.mrf.mxu3  ;;  %v517_v17 = vadd.f32 %v516_v5, %v504_v15 }
  0xb6   :  { %v530_v20 = vadd.f32 %v529_v7, %v517_v17 }
  0xbb   :  { %v518_v12 = vpop.f32.mrf.mxu2 }
  0xbc   :  { %v531_v13 = vpop.f32.mrf.mxu3 }
  0xc3   :  { %v568_v18 = vpop.f32.mrf.mxu2 }
  0xcb   :  { %v542_v21 = vpop.f32.mrf.mxu0  ;;  %v570_v25 = vpop.f32.mrf.mxu2 }
  0xcc   :  { %v555_v22 = vpop.f32.mrf.mxu1  ;;  %v543_v23 = vadd.f32 %v542_v21, %v530_v20 }
  0xce   :  { %v556_v24 = vadd.f32 %v555_v22, %v543_v23 }
  0xd0   :  { %v569_v26 = vadd.f32 %v568_v18, %v556_v24 }
  0xd2   :  { %v889_v27 = vmul.f32 -1.442695, %v569_v26 }
  0xd3   :  { %v544_v28 = vpop.f32.mrf.mxu0 }
  0xd4   :  { %v557_v29 = vpop.f32.mrf.mxu1  ;;  %987 = vpow2.f32 %v889_v27 }
  0xda   :  { %v988_v30 = vpop.eup %987 }
  0xdb   :  { %v575_v31 = vadd.f32 1.0, %v988_v30 }
  0xdd   :  { %989 = vrcp.f32 %v575_v31  ;;  %v587_v35 = vand.u32 2147483648, %v575_v31  ;;  %v585_v37 = vand.u32 2147483647, %v575_v31  ;;  %vm581_vm2 = vweird.f32 %v575_v31 }
  0xdf   :  { %v588_v39 = vor.u32 1.1754944e-38, %v587_v35  ;;  %vm586_vm4 = vcmp.eq.f32.partialorder %v585_v37, 8.507059e+37 }
  0xe3   :  { %v990_v32 = vpop.eup %989 }
  0xe4   :  { %v577_v33 = vmul.f32 %v990_v32, %v575_v31  ;;  %vm582_vm1 = vweird.f32 %v990_v32 }
  0xe5   :  { %vm583_vm3 = vmor %vm581_vm2, %vm582_vm1 }
  0xe6   :  { %v578_v34 = vsub.f32 1.0, %v577_v33 }
  0xe8   :  { %v579_v36 = vmul.f32 %v990_v32, %v578_v34 }
  0xea   :  { %v580_v38 = vadd.f32 %v990_v32, %v579_v36 }
  0xec   :  { %v584_v40 = vsel %vm583_vm3, %v990_v32, %v580_v38 }
  0xed   :  { %v589_v41 = vsel %vm586_vm4, %v588_v39, %v584_v40 }
  0xee   :  { %v591_v42 = vpack.c.bf16 %v589_v41, %v589_v41 }
  0xf0   :  { %668 = vmatmul.bf16.vlgmr.msrb.gmra.mxu3 %v591_v42 }
 0x173   :  { %v669_v44 = vpop.f32.mrf.mxu3 }
 0x174   :  { %v670_v45 = vadd.f32 %v986_v43, %v669_v44 }
 0x176   :  { %673 = vst [vmem:[#allocation8] sm:$0xff] %v670_v45 }
 0x177   :  { %684 = dma.vmem_to_hbm [thread:$0]  %s680_s11, 128, %s682_s14, [#allocation4]  }
 0x17b   :  { %v671_v46 = vpop.f32.mrf.mxu3 }
 0x17c   :  { %1091 = dma.done.wait [#allocation4], 128  }
 0x17d   :  { %1092 = vsyncadd [#allocation4], 4294967168 }
 0x17e   :  { %689 = vsyncpa [#allocation3], 1 }
 0x17f   :  { %690 = vsyncpa [#allocation6], 1 }
 0x180   :  { %691 = vsyncpa [#allocation4], 1 }

</bundles_post_ra>
